<compile_context>
chip_gen: v7x
topology: tpu7x:2x2x1
jax: 0.10.0
libtpu: 0.0.40
codegen_flags: <defaults>
</compile_context>

<pallas_src>
import functools

import jax
import jax.numpy as jnp
from jax.experimental import pallas as pl
from jax.experimental.pallas import tpu as pltpu

EPS = 1e-5


def _conv_bn_relu_kernel(x_ref, w_ref, b_ref, o_ref, *, stride):
    # x_ref: (1, Hp, Wp*Cin)          zero-padded input slab (lane-dense)
    # w_ref: (KH, Wp*Cin, Wout*Cout)  BN-folded, banded weight matrices
    # b_ref: (1, Wout*Cout)           BN-folded bias, tiled over Wout
    # o_ref: (1, Hout, Wout*Cout)     lane-dense output slab
    _, hout, wout_c = o_ref.shape
    kh_taps = w_ref.shape[0]

    x = x_ref[0]                                   # (Hp, Wp*Cin)
    acc = jnp.zeros((hout, wout_c), jnp.float32)
    for kh in range(kh_taps):                      # KH is tiny & static -> unrolled
        if stride == 1:
            rows = x[kh:kh + hout]
        else:
            rows = jax.lax.slice(
                x, (kh, 0), (kh + (hout - 1) * stride + 1, x.shape[1]),
                (stride, 1))
        # One MXU matmul per kh tap: M=Hout, K=Wp*Cin, N=Wout*Cout.
        acc = acc + jnp.dot(rows, w_ref[kh],
                            preferred_element_type=jnp.float32)
    acc = acc + b_ref[...]                          # (1, Wout*Cout) broadcast
    o_ref[0] = jnp.maximum(acc, 0.0).astype(o_ref.dtype)


def _fold_bn(w_oihw, b, gamma, beta, mean, var):
    # Fold eval-mode BatchNorm2d into the conv weights / bias:
    #   bn(conv(x) + b) = conv(x) * s + ((b - mean) * s + beta),  s = g/sqrt(v+eps)
    s = gamma / jnp.sqrt(var + EPS)                            # (Cout,)
    w_eff = jnp.transpose(w_oihw, (2, 3, 1, 0)) * s            # (KH, KW, Cin, Cout)
    b_eff = (b - mean) * s + beta                              # (Cout,)
    return w_eff, b_eff


def _build_banded_weights(w_eff, wp, wout, stride):
    # w_eff: (KH, KW, Cin, Cout) -> W_band: (KH, Wp*Cin, Wout*Cout) with
    #   W_band[kh, wp*Cin + c, wo*Cout + co] = w_eff[kh, wp - wo*stride, c, co]
    # (zero outside the 0 <= kw < KW band).  Built once in plain JAX so the
    # kernel needs no per-tap weight extraction or lane slicing.
    kh_, kw_, cin, cout = w_eff.shape
    kw_idx = jnp.arange(wp)[:, None] - jnp.arange(wout)[None, :] * stride  # (Wp, Wout)
    valid = (kw_idx >= 0) & (kw_idx < kw_)
    gathered = w_eff[:, jnp.clip(kw_idx, 0, kw_ - 1)]          # (KH, Wp, Wout, Cin, Cout)
    gathered = gathered * valid[None, :, :, None, None]
    band = jnp.transpose(gathered, (0, 1, 3, 2, 4))            # (KH, Wp, Cin, Wout, Cout)
    return band.reshape(kh_, wp * cin, wout * cout)


def conv2d_block(x_nchw, params, *, stride=1, padding=0):
    w_oihw, b, gamma, beta, mean, var = params
    cout, cin, kh, kw = w_oihw.shape
    n, cin_x, h, w_sp = x_nchw.shape
    assert cin_x == cin

    hout = (h + 2 * padding - kh) // stride + 1
    wout = (w_sp + 2 * padding - kw) // stride + 1
    hp = h + 2 * padding
    wp = w_sp + 2 * padding

    # NCHW -> NHWC, zero-pad (Conv2d padding), flatten to lane-dense (N, Hp, Wp*Cin).
    x = jnp.transpose(x_nchw, (0, 2, 3, 1))
    x = jnp.pad(x, ((0, 0), (padding, padding), (padding, padding), (0, 0)))
    x2d = x.reshape(n, hp, wp * cin)

    w_eff, b_eff = _fold_bn(w_oihw, b, gamma, beta, mean, var)
    w_band = _build_banded_weights(w_eff, wp, wout, stride)    # (KH, Wp*Cin, Wout*Cout)
    b_flat = jnp.tile(b_eff, wout).reshape(1, wout * cout)     # index wo*Cout+co -> b[co]

    kernel = functools.partial(_conv_bn_relu_kernel, stride=stride)
    out2d = pl.pallas_call(
        kernel,
        out_shape=jax.ShapeDtypeStruct((n, hout, wout * cout), x_nchw.dtype),
        grid=(n,),
        in_specs=[
            pl.BlockSpec((1, hp, wp * cin), lambda i: (i, 0, 0)),
            pl.BlockSpec((kh, wp * cin, wout * cout), lambda i: (0, 0, 0)),
            pl.BlockSpec((1, wout * cout), lambda i: (0, 0)),
        ],
        out_specs=pl.BlockSpec((1, hout, wout * cout), lambda i: (i, 0, 0)),
        compiler_params=pltpu.CompilerParams(
            dimension_semantics=("parallel",)),
    )(x2d, w_band, b_flat)
    # TODO(synk): for production-scale H/W/C, add a spatially tiled grid axis with
    # a (KH-1)-row halo so each TensorCore gets >2 pipelined steps and the block
    # stays inside v7x's 64 MiB VMEM; at these test sizes one block per image fits.

    # (N, Hout, Wout*Cout) is row-major identical to (N, Hout, Wout, Cout).
    out = out2d.reshape(n, hout, wout, cout)
    return jnp.transpose(out, (0, 3, 1, 2))                    # back to NCHW


def init_params(key, cin, cout, k):
    ks = jax.random.split(key, 6)
    w = 0.1 * jax.random.normal(ks[0], (cout, cin, k, k), jnp.float32)
    b = 0.1 * jax.random.normal(ks[1], (cout,), jnp.float32)
    gamma = 1.0 + 0.1 * jax.random.normal(ks[2], (cout,), jnp.float32)
    beta = 0.1 * jax.random.normal(ks[3], (cout,), jnp.float32)
    mean = 0.1 * jax.random.normal(ks[4], (cout,), jnp.float32)
    var = jnp.abs(1.0 + 0.1 * jax.random.normal(ks[5], (cout,), jnp.float32))
    return (w, b, gamma, beta, mean, var)


def ref_forward(x_nchw, params, *, stride=1, padding=0):
    # Pure-JAX reference (XLA conv + eval BN + ReLU) for correctness checking.
    w_oihw, b, gamma, beta, mean, var = params
    y = jax.lax.conv_general_dilated(
        x_nchw, w_oihw, window_strides=(stride, stride),
        padding=[(padding, padding), (padding, padding)],
        dimension_numbers=("NCHW", "OIHW", "NCHW"))
    y = y + b.reshape(1, -1, 1, 1)
    s = (gamma / jnp.sqrt(var + EPS)).reshape(1, -1, 1, 1)
    y = (y - mean.reshape(1, -1, 1, 1)) * s + beta.reshape(1, -1, 1, 1)
    return jnp.maximum(y, 0.0)


if __name__ == "__main__":
    key = jax.random.PRNGKey(0)
    k_x, k_p = jax.random.split(key)

    N, CIN, COUT, H, W, K, STRIDE, PAD = 2, 4, 8, 16, 16, 3, 1, 1
    x = jax.random.normal(k_x, (N, CIN, H, W), jnp.float32)
    params = init_params(k_p, CIN, COUT, K)

    out = conv2d_block(x, params, stride=STRIDE, padding=PAD)
    out = jax.block_until_ready(out)

    ref = ref_forward(x, params, stride=STRIDE, padding=PAD)
    assert out.shape == ref.shape and out.dtype == ref.dtype
    err = float(jnp.max(jnp.abs(out - ref)))
    assert jnp.allclose(out, ref, atol=1e-4, rtol=1e-4), f"max abs err = {err:e}"
    print("KERNEL_OK")
</pallas_src>

<mosaic_0001>
module attributes {stable_mosaic.version = 11 : i64} {
  func.func @_conv_bn_relu_kernel(%arg0: i32, %arg1: memref<1x18x72xf32, #tpu.memory_space<vmem>>, %arg2: memref<3x72x128xf32, #tpu.memory_space<vmem>>, %arg3: memref<1x128xf32, #tpu.memory_space<vmem>>, %arg4: memref<1x16x128xf32, #tpu.memory_space<vmem>>) attributes {dimension_semantics = [#tpu.dimension_semantics<parallel>], iteration_bounds = array<i64: 2>, scalar_prefetch = 0 : i64, scratch_operands = 0 : i64, tpu.core_type = #tpu.core_type<tc>, window_params = [{transform_indices = @transform_0, window_bounds = array<i64: 1, 18, 72>}, {pipeline_mode = #tpu.pipeline_mode<synchronous>, transform_indices = @transform_1, window_bounds = array<i64: 3, 72, 128>}, {pipeline_mode = #tpu.pipeline_mode<synchronous>, transform_indices = @transform_2, window_bounds = array<i64: 1, 128>}, {transform_indices = @transform_3, window_bounds = array<i64: 1, 16, 128>}]} {
    %c0 = arith.constant 0 : index
    %c0_0 = arith.constant 0 : index
    %c0_1 = arith.constant 0 : index
    %0 = vector.load %arg1[%c0, %c0_0, %c0_1] : memref<1x18x72xf32, #tpu.memory_space<vmem>>, vector<1x18x72xf32>
    %1 = vector.shape_cast %0 : vector<1x18x72xf32> to vector<18x72xf32>
    %cst = arith.constant 0.000000e+00 : f32
    %2 = vector.broadcast %cst : f32 to vector<16x128xf32>
    %3 = vector.extract_strided_slice %1 {offsets = [0, 0], sizes = [16, 72], strides = [1, 1]} : vector<18x72xf32> to vector<16x72xf32>
    %c0_2 = arith.constant 0 : index
    %c0_3 = arith.constant 0 : index
    %c0_4 = arith.constant 0 : index
    %4 = vector.load %arg2[%c0_2, %c0_3, %c0_4] : memref<3x72x128xf32, #tpu.memory_space<vmem>>, vector<1x72x128xf32>
    %5 = vector.shape_cast %4 : vector<1x72x128xf32> to vector<72x128xf32>
    %cst_5 = arith.constant dense<0.000000e+00> : vector<16x128xf32>
    %6 = tpu.matmul %3, %5, %cst_5 {dimension_numbers = #tpu.dot_dimension_numbers<[1], [0], [0], [1], [0, 0, 1, 1], [], []>} : vector<16x72xf32>, vector<72x128xf32>, vector<16x128xf32> -> vector<16x128xf32>
    %7 = arith.addf %2, %6 : vector<16x128xf32>
    %8 = vector.extract_strided_slice %1 {offsets = [1, 0], sizes = [16, 72], strides = [1, 1]} : vector<18x72xf32> to vector<16x72xf32>
    %c1 = arith.constant 1 : index
    %c0_6 = arith.constant 0 : index
    %c0_7 = arith.constant 0 : index
    %9 = vector.load %arg2[%c1, %c0_6, %c0_7] : memref<3x72x128xf32, #tpu.memory_space<vmem>>, vector<1x72x128xf32>
    %10 = vector.shape_cast %9 : vector<1x72x128xf32> to vector<72x128xf32>
    %cst_8 = arith.constant dense<0.000000e+00> : vector<16x128xf32>
    %11 = tpu.matmul %8, %10, %cst_8 {dimension_numbers = #tpu.dot_dimension_numbers<[1], [0], [0], [1], [0, 0, 1, 1], [], []>} : vector<16x72xf32>, vector<72x128xf32>, vector<16x128xf32> -> vector<16x128xf32>
    %12 = arith.addf %7, %11 : vector<16x128xf32>
    %13 = vector.extract_strided_slice %1 {offsets = [2, 0], sizes = [16, 72], strides = [1, 1]} : vector<18x72xf32> to vector<16x72xf32>
    %c2 = arith.constant 2 : index
    %c0_9 = arith.constant 0 : index
    %c0_10 = arith.constant 0 : index
    %14 = vector.load %arg2[%c2, %c0_9, %c0_10] : memref<3x72x128xf32, #tpu.memory_space<vmem>>, vector<1x72x128xf32>
    %15 = vector.shape_cast %14 : vector<1x72x128xf32> to vector<72x128xf32>
    %cst_11 = arith.constant dense<0.000000e+00> : vector<16x128xf32>
    %16 = tpu.matmul %13, %15, %cst_11 {dimension_numbers = #tpu.dot_dimension_numbers<[1], [0], [0], [1], [0, 0, 1, 1], [], []>} : vector<16x72xf32>, vector<72x128xf32>, vector<16x128xf32> -> vector<16x128xf32>
    %17 = arith.addf %12, %16 : vector<16x128xf32>
    %c0_12 = arith.constant 0 : index
    %c0_13 = arith.constant 0 : index
    %18 = vector.load %arg3[%c0_12, %c0_13] : memref<1x128xf32, #tpu.memory_space<vmem>>, vector<1x128xf32>
    %19 = vector.broadcast %18 : vector<1x128xf32> to vector<16x128xf32>
    %20 = arith.addf %17, %19 : vector<16x128xf32>
    %cst_14 = arith.constant 0.000000e+00 : f32
    %21 = vector.broadcast %cst_14 : f32 to vector<16x128xf32>
    %22 = arith.maximumf %20, %21 : vector<16x128xf32>
    %c0_15 = arith.constant 0 : index
    %c0_16 = arith.constant 0 : index
    %c0_17 = arith.constant 0 : index
    %23 = vector.load %arg4[%c0_15, %c0_16, %c0_17] : memref<1x16x128xf32, #tpu.memory_space<vmem>>, vector<1x16x128xf32>
    %24 = vector.shape_cast %23 : vector<1x16x128xf32> to vector<16x128xf32>
    %25 = vector.shape_cast %22 : vector<16x128xf32> to vector<1x16x128xf32>
    tpu.vector_store %arg4[%c0_15, %c0_16, %c0_17], %25 {strides = array<i32>} : memref<1x16x128xf32, #tpu.memory_space<vmem>>, vector<1x16x128xf32>,
    return
  }
  func.func @transform_0(%arg0: i32) -> (i32, i32, i32) {
    %c0_i32 = arith.constant 0 : i32
    %c0_i32_0 = arith.constant 0 : i32
    %c0_i32_1 = arith.constant 0 : i32
    return %arg0, %c0_i32, %c0_i32_0 : i32, i32, i32
  }
  func.func @transform_1(%arg0: i32) -> (i32, i32, i32) {
    %c0_i32 = arith.constant 0 : i32
    %c0_i32_0 = arith.constant 0 : i32
    %c0_i32_1 = arith.constant 0 : i32
    %c0_i32_2 = arith.constant 0 : i32
    return %c0_i32, %c0_i32_0, %c0_i32_1 : i32, i32, i32
  }
  func.func @transform_2(%arg0: i32) -> (i32, i32) {
    %c0_i32 = arith.constant 0 : i32
    %c0_i32_0 = arith.constant 0 : i32
    %c0_i32_1 = arith.constant 0 : i32
    return %c0_i32, %c0_i32_0 : i32, i32
  }
  func.func @transform_3(%arg0: i32) -> (i32, i32, i32) {
    %c0_i32 = arith.constant 0 : i32
    %c0_i32_0 = arith.constant 0 : i32
    %c0_i32_1 = arith.constant 0 : i32
    return %arg0, %c0_i32, %c0_i32_0 : i32, i32, i32
  }
}

</mosaic_0001>

<bundles_post_ra>
// kernel: tpu_custom_call.1
= control target key start
LH: loop header
LB: loop body
LE: loop exit
PB: predicated region body
PF: predicated region fallthrough
CT: control target
= control target key end

     0   :  { %8 = vsyncpa [#allocation3], 0  ;;  %s1079_s0 = inlined_call_operand.vmem [shape: f32[2,18,72], index: 0, kind: input, shape index: {}]   ;;  %s1080_s1 = inlined_call_operand.hbm [shape: f32[3,72,128], index: 1, kind: input, shape index: {}]   ;;  %s1081_s2 = inlined_call_operand.vmem [shape: f32[1,128], index: 2, kind: input, shape index: {}]   ;;  %s1082_s3 = inlined_call_operand.hbm [shape: f32[2,16,128], index: 3, kind: output, shape index: {}]  }
   0x1   :  { %9 = vsyncpa [#allocation4], 0 }
   0x2   :  { %11 = vsyncpa [#allocation4 + $0x1], 0  ;;  %s918_s12 = smov 0   ;;  %s920_s13 = smov 0  }
   0x3   :  { %s922_s14 = smov 0   ;;  %s924_s15 = smov 0  }
   0x4 LB: > { %s939_s16 = sadd.s32 4294967295, %s890_s15   ;;  %s572_s17 = sadd.s32 4294967294, %s890_s15   ;;  %s890_s15 = sphi %s924_s15, %s1098_s15   ;;  %s886_s14 = sphi %s922_s14, %s1097_s14   ;;  %s882_s13 = sphi %s920_s13, %s1096_s13   ;;  %s878_s12 = sphi %s918_s12, %s1095_s12  }
   0x5   : > { %s943_s18 = sadd.s32 1, %s890_s15   ;;  %s92_s19 = sadd.s32 1, %s886_s14 }
   0x6   : > { %s89_s20 = ssub.s32 %s890_s15, %s943_s18  ;;  %p102_p0 = scmp.ne.s32.totalorder %s886_s14, %s882_s13 }
   0x7   : > { %p90_p1 = scmp.eq.s32.totalorder %s89_s20, 0  ;;  %p103_p2 = scmp.eq.s32.totalorder %s939_s16, 1 }
   0x8   : > { %p108_p3 = scmp.ne.s32.totalorder %s882_s13, %s878_s12  ;;  %p109_p4 = scmp.eq.s32.totalorder %s572_s17, 1 }
   0x9   : > { %s954_s21 = scalar_select %p90_p1, %s886_s14, %s92_s19  }
   0xa   : > { %p956_p5 = por %p103_p2, %p102_p0  ;;  %p960_p6 = por %p109_p4, %p108_p3 }
   0xb   : > { %p573_p7 = scmp.ge.s32.totalorder %s890_s15, 1  ;;  %p116_p8 = scmp.lt.s32.totalorder %s890_s15, 3 }
   0xc   : > { %s1086_s22 = scalar_select %p956_p5, 1, 0 }
   0xd   : > { %s1087_s23 = scalar_select %p960_p6, 1, 0 }
   0xe   : > { %p1083_p9 = scmp.eq.s32.totalorder %s939_s16, 0  ;;  %p967_p10 = pnand %p573_p7, %p116_p8 }
   0xf   : > { %s892_s25 = smov [#allocation2]   ;;  %s796_s30 = scalar_lea.hbm %s1080_s1, 3456 }
  0x10   : > { %s1088_s24 = scalar_select %p967_p10, 1, 0 }
  0x11   : > { %s128_s26 = sshll.u32 %s892_s25, 4  ;;  %p748_p11 = pneg %p967_p10  ;;  %s129_s26 = int_to_ptr.vmem [resolvable:$true] %s128_s26 }
  0x12   : > { %p797_p13 = scmp.ne.s32.totalorder %s1080_s1, %s796_s30  ;;  %p803_p3 = scmp.lt.u32.totalorder %s796_s30, %s1080_s1 }
  0x13   : > { %p975_p12 = pnand %p1083_p9, %p748_p11 }
  0x15   : > { %p798_p0 = pneg %p975_p12 }
  0x17   : > { %p799_p1 = pnand %p798_p0, %p797_p13 }
  0x19   : > { %p800_p2 = pneg %p799_p1 }
  0x1b   : > { %p805_p4 = pnand %p803_p3, %p800_p2 }
  0x1d   : > { %808 = shalt.err (!%p805_p4)
}
  0x1e   : > { %s809_s8 = scalar_lea.vmem %s129_s26, 3456  ;;  %p817_p9 = scmp.lt.s32.totalorder %s129_s26, %s129_s26 }
  0x1f   : > { %p810_p7 = scmp.ne.s32.totalorder %s129_s26, %s809_s8  ;;  %p818_p6 = scmp.lt.s32.totalorder %s809_s8, %s809_s8 }
  0x21   : > { %p812_p8 = pnand %p810_p7, %p798_p0  ;;  %p819_p5 = por %p818_p6, %p817_p9 }
  0x23   : > { %p813_p11 = pneg %p812_p8 }
  0x25   : > { %p820_p10 = pnand %p819_p5, %p813_p11 }
  0x27   : > { %823 = shalt.err (!%p820_p10)
}
  0x28   : > { %s893_s9 = smov 128   ;;  %s894_s10 = smov 8  }
  0x29   : > { %751 = dma.hbm_to_vmem [thread:$0]  (!%p975_p12), %s1080_s1, 3456, %s129_s26, [#allocation3], %s893_s9, %s893_s9, %s894_s10  }
  0x2a   : > { %p1090_p13 = scmp.ne.s32.totalorder %s1088_s24, 0 }
  0x2b   : > { %p1091_p1 = scmp.eq.s32.totalorder (!%p1090_p13), %s939_s16, 0 }
  0x2c   : > { %155 = sbr.rel (%p1090_p13) target bundleno = 325 (0x145), region = 32 }
  0x33   : > { %869 = dma.done.wait (%p1091_p1), [#allocation3], 3456   ;;  %p1092_p0 = pmov %p1091_p1 }
  0x34   : > { %p179_p5 = scmp.lt.s32.totalorder %s939_s16, 1  ;;  %v187_v0 = vld [vmem:[#allocation2] sm:$0xff]  ;;  %v188_v1 = vld [vmem:[#allocation2 + $0x8] sm:$0xff]  ;;  %v189_v2 = vld [vmem:[#allocation2 + $0x10] sm:$0xff]  ;;  %vm215_vm0 = vcmask 588800   ;;  %vm209_vm1 = vcmask 1046528  }
  0x35   : > { %871 = vsyncadd (%p1092_p0), [#allocation3], 4294963840  ;;  %v705_v3 = vpack.c.bf16 %v188_v1, %v187_v0  ;;  %v190_v4 = vld [vmem:[#allocation2 + $0x18] sm:$0xff]  ;;  %v191_v6 = vld [vmem:[#allocation2 + $0x20] sm:$0xff]  ;;  %vm384_vm2 = vcmask 1045504   ;;  %s176_s24 = sand.u32 1, %s882_s13  }
  0x36   : > { %s180_s19 = scalar_select %p179_p5, %s939_s16, 1  ;;  %v709_v5 = vpack.c.bf16 %v190_v4, %v189_v2  ;;  %v192_v7 = vld [vmem:[#allocation2 + $0x28] sm:$0xff]  ;;  %v198_v9 = vld [vmem:[#allocation2 + $0x50] sm:$0xff]  ;;  %v199_v15 = vld [vmem:[#allocation2 + $0x58] sm:$0xff] }
  0x37   : > { %706 = vmatprep.subr.bf16.mxu0 %v705_v3  ;;  %v197_v8 = vld [vmem:[#allocation2 + $0x48] sm:$0xff]  ;;  %v713_v13 = vpack.c.bf16 %v192_v7, %v191_v6  ;;  %v200_v16 = vld [vmem:[#allocation2 + $0x60] sm:$0xff]  ;;  %v193_v17 = vld [vmem:[#allocation2 + $0x30] sm:$0xff]  ;;  %s578_s28 = sshll.u32 %s176_s24, 4  ;;  %s592_s6 = sshll.u32 %s939_s16, 8 }
  0x38   : > { %s741_s20 = smul.u32 24, %s180_s19  ;;  %708 = vmatpush3.bf16.msra.mxu0 %v705_v3  ;;  %v689_v11 = vpack.c.bf16 %v198_v9, %v197_v8  ;;  %v194_v18 = vld [vmem:[#allocation2 + $0x38] sm:$0xff]  ;;  %v693_v19 = vpack.c.bf16 %v200_v16, %v199_v15  ;;  %v201_v20 = vld [vmem:[#allocation2 + $0x68] sm:$0xff]  ;;  %v202_v22 = vld [vmem:[#allocation2 + $0x70] sm:$0xff]  ;;  %s178_s4 = scalar_lea.vmem [#allocation5], %s578_s28 }
  0x39   : > { %710 = vmatprep.subr.bf16.mxu0 %v709_v5  ;;  %v697_v23 = vpack.c.bf16 %v202_v22, %v201_v20  ;;  %v717_v25 = vpack.c.bf16 %v194_v18, %v193_v17  ;;  %v203_v26 = vld [vmem:[#allocation2 + $0x78] sm:$0xff]  ;;  %v204_v27 = vld [vmem:[#allocation2 + $0x80] sm:$0xff]  ;;  %v375_v31 = vld [vmem:[#allocation2 + $0x90] sm:$0xff]  ;;  %s498_s5 = sshll.u32 %s178_s4, 4  ;;  %s1036_s9 = scalar_lea.hbm %s1082_s3, %s592_s6  ;;  %s1031_s5 = int_to_ptr.vmem [resolvable:$true] %s498_s5 }
  0x3a   : > { %s1006_s26 = scalar_lea.vmem %s1079_s0, %s741_s20  ;;  %690 = vmatprep.subr.bf16.mxu1 %v689_v11  ;;  %v701_v28 = vpack.c.bf16 %v204_v27, %v203_v26  ;;  %v195_v29 = vld [vmem:[#allocation2 + $0x40] sm:$0xff]  ;;  %v376_v32 = vld [vmem:[#allocation2 + $0x98] sm:$0xff]  ;;  %v378_v36 = vld [vmem:[#allocation2 + $0xa8] sm:$0xff]  ;;  %s1038_s10 = scalar_lea.sflag [#allocation4], %s176_s24 }
  0x3b   : > { %v184_v10 = vld [vmem:[%s1006_s26] sm:$0xff]  ;;  %v1011_v14 = vld [vmem:[%s1006_s26 + $0x8] sm:$0xff]  ;;  %692 = vmatpush3.bf16.msra.mxu1 %v689_v11  ;;  %v186_v30 = vld [vmem:[%s1006_s26 + $0x10] sm:$0x3]  ;;  %v721_v38 = vpack.c.bf16 %v376_v32, %v375_v31  ;;  %s824_s11 = scalar_lea.vmem %s1031_s5, 256  ;;  %p1093_p9 = scmp.ne.s32.totalorder %s1086_s22, 0 }
  0x3c   : > { %v210_v12 = vrot.slane %v184_v10, 1  ;;  %665 = vmatprep.mubr.msk.f32.mxu0 %vm215_vm0, %v184_v10  ;;  %v211_v21 = vrot.slane %v1011_v14, 1  ;;  %712 = vmatpush3.bf16.msra.mxu0 %v709_v5  ;;  %v385_v33 = vrot.slane %v184_v10, 2  ;;  %v386_v34 = vrot.slane %v1011_v14, 2  ;;  %v377_v35 = vld [vmem:[#allocation2 + $0xa0] sm:$0xff]  ;;  %v205_v39 = vld [vmem:[#allocation2 + $0x88] sm:$0xff]  ;;  %p825_p6 = scmp.ne.s32.totalorder %s1031_s5, %s824_s11 }
  0x3d   : > { %694 = vmatprep.subr.bf16.mxu1 %v693_v19  ;;  %714 = vmatprep.subr.bf16.mxu0 %v713_v13  ;;  %v213_v37 = vrot.slane %v186_v30, 1  ;;  %v725_v40 = vpack.c.bf16 %v378_v36, %v377_v35  ;;  %v379_v42 = vld [vmem:[#allocation2 + $0xb0] sm:$0xff]  ;;  %v380_v43 = vld [vmem:[#allocation2 + $0xb8] sm:$0xff]  ;;  %v381_v46 = vld [vmem:[#allocation2 + $0xc0] sm:$0xff]  ;;  %v388_v49 = vrot.slane %v186_v30, 2  ;;  %s895_s16 = smov [#allocation5]  }
  0x3e   : > { %v212_v24 = vsel %vm209_vm1, %v210_v12, %v211_v21  ;;  %v387_v41 = vsel %vm384_vm2, %v385_v33, %v386_v34  ;;  %v729_v45 = vpack.c.bf16 %v380_v43, %v379_v42  ;;  %v382_v47 = vld [vmem:[#allocation2 + $0xc8] sm:$0xff]  ;;  %v383_v50 = vld [vmem:[#allocation2 + $0xd0] sm:$0xff]  ;;  %p826_p10 = pnand %p825_p6, %p1093_p9  ;;  %s828_s17 = sshll.u32 %s895_s16, 4  ;;  %s829_s17 = int_to_ptr.vmem [resolvable:$false] %s828_s17 }
  0x3f   : > { %644 = vmatprep.mubr.msk.f32.mxu1 %vm215_vm0, %v212_v24  ;;  %696 = vmatpush3.bf16.msra.mxu1 %v693_v19  ;;  %v214_v44 = vsel %vm209_vm1, %v211_v21, %v213_v37  ;;  %v733_v48 = vpack.c.bf16 %v382_v47, %v381_v46  ;;  %v389_v51 = vsel %vm384_vm2, %v386_v34, %v388_v49  ;;  %v586_v55 = vld [vmem:[%s1081_s2] ss:$0 sm:$0xff]  ;;  %s830_s19 = scalar_lea.vmem %s829_s17, 512  ;;  %p831_p2 = scmp.lt.s32.totalorder %s1031_s5, %s829_s17 }
  0x40   : > { %716 = vmatpush3.bf16.msra.mxu0 %v713_v13  ;;  %698 = vmatprep.subr.bf16.mxu1 %v697_v23  ;;  %p827_p12 = pneg %p826_p10  ;;  %p832_p3 = scmp.lt.s32.totalorder %s830_s19, %s824_s11 }
  0x41   : > { %718 = vmatprep.subr.bf16.mxu0 %v717_v25 }
  0x42   : > { %p833_p4 = por %p832_p3, %p831_p2 }
  0x43   : > { %700 = vmatpush3.bf16.msra.mxu1 %v697_v23 }
  0x44   : > { %720 = vmatpush3.bf16.msra.mxu0 %v717_v25  ;;  %702 = vmatprep.subr.bf16.mxu1 %v701_v28  ;;  %p834_p7 = pnand %p833_p4, %p827_p12 }
  0x45   : > { %663 = vmatprep.subr.mxu0 %v195_v29 }
  0x47   : > { %704 = vmatpush3.bf16.msra.mxu1 %v701_v28 }
  0x48   : > { %664 = vmatpush3.msra.mxu0 %v195_v29  ;;  %642 = vmatprep.subr.mxu1 %v205_v39 }
  0x49   : > { %722 = vmatprep.subr.bf16.mxu0 %v721_v38  ;;  %666 = vmatmul.mubr.msk.f32.vlgmr.msra.gmra.mrb[0].mxu0 %vm215_vm0, %v1011_v14 }
  0x4a   : > { %724 = vmatpush3.bf16.msra.mxu0 %v721_v38  ;;  %686 = vmatprep.mubr.msk.f32.mxu0 %vm215_vm0, %v387_v41 }
  0x4b   : > { %726 = vmatprep.subr.bf16.mxu0 %v725_v40  ;;  %643 = vmatpush3.msra.mxu1 %v205_v39 }
  0x4c   : > { %645 = vmatmul.mubr.msk.f32.vlgmr.msra.gmra.mrb[0].mxu1 %vm215_vm0, %v214_v44 }
  0x4e   : > { %728 = vmatpush3.bf16.msra.mxu0 %v725_v40 }
  0x4f   : > { %730 = vmatprep.subr.bf16.mxu0 %v729_v45 }
  0x52   : > { %732 = vmatpush3.bf16.msra.mxu0 %v729_v45 }
  0x53   : > { %734 = vmatprep.subr.bf16.mxu0 %v733_v48 }
  0x56   : > { %736 = vmatpush3.bf16.msra.mxu0 %v733_v48 }
  0x57   : > { %684 = vmatprep.subr.mxu0 %v383_v50 }
  0x5a   : > { %685 = vmatpush3.msra.mxu0 %v383_v50 }
  0x5b   : > { %687 = vmatmul.mubr.msk.f32.vlgmr.msra.gmra.mrb[0].mxu0 %vm215_vm0, %v389_v51 }
 0x11f   : > { %v646_v52 = vpop.f32.mrb[0].mxu1 }
 0x120   : > { %v286_v53 = vpop.f32.mrb[1].mxu1 }
 0x12e   : > { %v688_v54 = vpop.f32.mrb[0].mxu0 }
 0x12f   : > { %v737_v56 = vadd.f32 %v688_v54, %v646_v52  ;;  %v460_v57 = vpop.f32.mrb[1].mxu0 }
 0x130   : > { %v738_v58 = vadd.f32 %v460_v57, %v286_v53 }
 0x131   : > { %v479_v59 = vadd.f32 %v737_v56, %v586_v55 }
 0x132   : > { %v478_v60 = vadd.f32 %v738_v58, %v586_v55 }
 0x133   : > { %v481_v61 = vmax.f32 %v479_v59, 0.0 }
 0x134   : > { %v480_v62 = vmax.f32 %v478_v60, 0.0 }
 0x135   : > { %483 = vst [vmem:[%s178_s4 + $0x8] sm:$0xff] %v481_v61 }
 0x136   : > { %482 = vst [vmem:[%s178_s4] sm:$0xff] %v480_v62 }
 0x137   : > { %837 = shalt.err (!%p834_p7)
}
 0x138   : > { %s838_s20 = scalar_lea.hbm %s1036_s9, 256  ;;  %s842_s26 = scalar_lea.hbm %s1082_s3, 512 }
 0x139   : > { %p839_p8 = scmp.ne.s32.totalorder %s1036_s9, %s838_s20  ;;  %p843_p1 = scmp.lt.u32.totalorder %s1036_s9, %s1082_s3 }
 0x13a   : > { %p844_p0 = scmp.lt.u32.totalorder %s842_s26, %s838_s20  ;;  %p846_p6 = scmp.lt.u32.totalorder %s838_s20, %s1036_s9 }
 0x13b   : > { %p840_p11 = pnand %p839_p8, %p1093_p9 }
 0x13c   : > { %p845_p5 = por %p844_p0, %p843_p1 }
 0x13d   : > { %p841_p13 = pneg %p840_p11 }
 0x13e   : > { %p847_p10 = por %p846_p6, %p845_p5 }
 0x140   : > { %p848_p12 = pnand %p847_p10, %p841_p13 }
 0x142   : > { %851 = shalt.err (!%p848_p12)
}
 0x143   : > { %s896_s29 = smov 128   ;;  %s897_s30 = smov 8  }
 0x144   : > { %746 = dma.vmem_to_hbm [thread:$0]  (%p1093_p9), %s1031_s5, 256, %s1036_s9, %s1038_s10, %s896_s29, %s896_s29, %s897_s30  }
 0x145 PF: > { %p758_p2 = scmp.ge.s32.totalorder %s890_s15, 2  ;;  %s513_s4 = sand.u32 1, %s878_s12  }
 0x146   : > { %p1094_p3 = scmp.ne.s32.totalorder %s1087_s23, 0  ;;  %s514_s6 = scalar_lea.sflag [#allocation4], %s513_s4 }
 0x148   : > { %p753_p4 = pnand %p758_p2, %p1094_p3 }
 0x14a   : > { %873 = dma.done.wait (!%p753_p4), %s514_s6, 256  }
 0x14b   : > { %875 = vsyncadd (!%p753_p4), %s514_s6, 4294967040  ;;  %p14_p7 = scmp.ge.s32.totalorder %s943_s18, 4   ;;  %s1095_s12 = smov %s882_s13 }
 0x14c   : > { %s1096_s13 = smov %s886_s14  ;;  %s1097_s14 = smov %s954_s21 }
 0x14d   : > { %s1098_s15 = smov %s943_s18  ;;  %16 = sbr.rel (!%p14_p7) target bundleno = 4 (0x4), region = 74 }
 0x154   :  { %519 = vsyncpa [#allocation3], 1 }
 0x155   :  { %521 = vsyncpa [#allocation3 + $0x1], 1 }
 0x156   :  { %522 = vsyncpa [#allocation4], 1 }
 0x157   :  { %524 = vsyncpa [#allocation4 + $0x1], 1 }

</bundles_post_ra>
